<compile_context>
chip_gen: v6e
topology: v6e:2x2x1
jax: 0.10.0
libtpu: 0.0.40
codegen_flags: <defaults>
</compile_context>

<pallas_src>
import functools

import jax
import jax.numpy as jnp
from jax.experimental import pallas as pl
from jax.experimental.pallas import tpu as pltpu


# ---------------------------------------------------------------------------
# Kernels
# ---------------------------------------------------------------------------
def _embed_kernel(feat_ref, w_ref, b_ref, out_ref):
    """out = feat @ W + b (no pre-existing invariant_node_features)."""
    emb = jnp.dot(feat_ref[...], w_ref[...], preferred_element_type=jnp.float32)
    out_ref[...] = (emb + b_ref[...]).astype(out_ref.dtype)


def _embed_concat_kernel(d_prev, two_store, prev_ref, feat_ref, w_ref, b_ref,
                         out_ref):
    """out[:, :d_prev] = prev ; out[:, d_prev:] = feat @ W + b."""
    emb = jnp.dot(feat_ref[...], w_ref[...], preferred_element_type=jnp.float32)
    emb = (emb + b_ref[...]).astype(out_ref.dtype)
    if two_store:
        # 128-aligned boundary: both slice stores are unmasked lane-dense vst.
        out_ref[:, :d_prev] = prev_ref[...]
        out_ref[:, d_prev:] = emb
    else:
        # Unaligned / narrow boundary: build the full row in vregs (XLU lane
        # shift rides a free slot) and issue ONE store per tile instead of two
        # overlapping masked vst into the same (8,128) output tile.
        out_ref[...] = jnp.concatenate([prev_ref[...], emb], axis=-1)


def _embed_into_kernel(feat_ref, w_ref, b_ref, _slab_ref, out_ref):
    """Write feat @ W + b into one column window of the aliased output slab.

    `_slab_ref` is the aliased destination (memory_space=pl.ANY, never read by
    the kernel); `out_ref` is the [blk_n, d_emb] column window of the SAME HBM
    buffer selected by the out_spec, so all other columns are preserved.
    """
    emb = jnp.dot(feat_ref[...], w_ref[...], preferred_element_type=jnp.float32)
    out_ref[...] = (emb + b_ref[...]).astype(out_ref.dtype)


# ---------------------------------------------------------------------------
# Tiling helpers
# ---------------------------------------------------------------------------
# Conservative per-kernel VMEM budget: fits v7x's 32 MiB default scoped VMEM
# (64 MiB physical) with headroom; v5e/v6e have 128 MiB and never bind here.
_VMEM_BUDGET_BYTES = 16 * 1024 * 1024


def _round_up(x, m):
    return -(-x // m) * m


def _cap_tile_n(tile_n, widths, itemsize):
    """Cap the node-tile so lane-padded, double-buffered blocks fit the budget."""
    def blk_bytes(bn):
        rows = _round_up(bn, 8)
        return sum(rows * _round_up(w, 128) * itemsize * 2 for w in widths)

    while tile_n > 256 and blk_bytes(tile_n) > _VMEM_BUDGET_BYTES:
        tile_n //= 2
    return max(_round_up(tile_n, 8), 256)


def _pick_block(n, tile_n):
    """Choose the node-tile size and grid length.

    * tiny N: single block (the ~0.35 us per-grid-step overhead dominates).
    * N <= tile_n but not tiny: split into >= 2 blocks so
      dimension_semantics=("parallel",) can shard the node axis across both
      TensorCores on v7x.
    * large N: tile_n blocks; the partial last block is masked on writeback.
    """
    if n <= 512:
        return n, 1
    if n <= tile_n:
        blk = _round_up(pl.cdiv(n, 2), 8)
        return blk, pl.cdiv(n, blk)
    return tile_n, pl.cdiv(n, tile_n)


# ---------------------------------------------------------------------------
# Wrappers
# ---------------------------------------------------------------------------
@functools.partial(jax.jit, static_argnames=("tile_n",))
def invariant_features_forward(feature, weight, bias, prev=None, *, tile_n=2048):
    """Pallas implementation of InvariantFeatures.forward (original semantics).

    feature : [N, F]
    weight  : [F, D_emb]
    bias    : [D_emb]
    prev    : [N, D_prev] or None  (batch.invariant_node_features)
    returns : new invariant_node_features [N, D_prev + D_emb] (or [N, D_emb])
    """
    n, f = feature.shape
    d_emb = weight.shape[1]
    bias2d = bias.reshape(1, d_emb)
    itemsize = jnp.dtype(feature.dtype).itemsize
    cparams = pltpu.CompilerParams(dimension_semantics=("parallel",))
    # NOTE: if the xprof trace ever shows exposed DMA between steps, bump the
    # streamed in_specs to pipeline_mode=pl.Buffered(3); default 2-deep
    # buffering is usually within 2%.

    if prev is None:
        tile_n = _cap_tile_n(tile_n, (f, d_emb), itemsize)
        blk_n, n_blocks = _pick_block(n, tile_n)
        cost = pl.CostEstimate(
            flops=2 * n * f * d_emb,
            transcendentals=0,
            bytes_accessed=itemsize * (n * f + f * d_emb + d_emb + n * d_emb),
        )
        return pl.pallas_call(
            _embed_kernel,
            grid=(n_blocks,),
            in_specs=[pl.BlockSpec((blk_n, f), lambda i: (i, 0)),
                      pl.BlockSpec((f, d_emb), lambda i: (0, 0)),
                      pl.BlockSpec((1, d_emb), lambda i: (0, 0))],
            out_specs=pl.BlockSpec((blk_n, d_emb), lambda i: (i, 0)),
            out_shape=jax.ShapeDtypeStruct((n, d_emb), feature.dtype),
            compiler_params=cparams,
            cost_estimate=cost,
        )(feature, weight, bias2d)

    d_prev = prev.shape[1]
    d_out = d_prev + d_emb
    tile_n = _cap_tile_n(tile_n, (f, d_prev, d_out), itemsize)
    blk_n, n_blocks = _pick_block(n, tile_n)
    two_store = (d_prev % 128 == 0)   # lane-aligned boundary -> unmasked stores
    cost = pl.CostEstimate(
        flops=2 * n * f * d_emb,
        transcendentals=0,
        bytes_accessed=itemsize * (n * f + n * d_prev + f * d_emb + d_emb
                                   + n * d_out),
    )
    return pl.pallas_call(
        functools.partial(_embed_concat_kernel, d_prev, two_store),
        grid=(n_blocks,),
        in_specs=[pl.BlockSpec((blk_n, d_prev), lambda i: (i, 0)),
                  pl.BlockSpec((blk_n, f), lambda i: (i, 0)),
                  pl.BlockSpec((f, d_emb), lambda i: (0, 0)),
                  pl.BlockSpec((1, d_emb), lambda i: (0, 0))],
        out_specs=pl.BlockSpec((blk_n, d_out), lambda i: (i, 0)),
        out_shape=jax.ShapeDtypeStruct((n, d_out), feature.dtype),
        compiler_params=cparams,
        cost_estimate=cost,
    )(prev, feature, weight, bias2d)


@functools.partial(jax.jit, static_argnames=("col_offset", "tile_n"),
                   donate_argnums=(0,))
def invariant_features_write_into(slab, feature, weight, bias, *, col_offset,
                                  tile_n=2048):
    """Write `feature @ W + b` into columns [col_offset, col_offset + D_emb) of
    a preallocated invariant_node_features slab [N, D_total].

    The slab is aliased with the output (input_output_aliases), so untouched
    columns are preserved and NO prev bytes are re-streamed: per call HBM
    traffic is just the feature read + the D_emb-wide column write — O(k) total
    traffic for k stacked embeddings instead of O(k^2) repeated concatenation.
    """
    n, f = feature.shape
    d_emb = weight.shape[1]
    d_total = slab.shape[1]
    assert slab.shape[0] == n and slab.dtype == feature.dtype
    # 128-lane alignment keeps the column-window writeback an unmasked vst and
    # satisfies the (8,128) block constraint on the output window.  Fall back
    # to invariant_features_forward (concat) for unaligned widths.
    assert d_emb % 128 == 0 and col_offset % d_emb == 0 and col_offset % 128 == 0
    assert col_offset + d_emb <= d_total
    col_block = col_offset // d_emb

    itemsize = jnp.dtype(feature.dtype).itemsize
    tile_n = _cap_tile_n(tile_n, (f, d_emb), itemsize)
    blk_n, n_blocks = _pick_block(n, tile_n)
    bias2d = bias.reshape(1, d_emb)
    cparams = pltpu.CompilerParams(dimension_semantics=("parallel",))
    cost = pl.CostEstimate(
        flops=2 * n * f * d_emb,
        transcendentals=0,
        bytes_accessed=itemsize * (n * f + f * d_emb + d_emb + n * d_emb),
    )
    return pl.pallas_call(
        _embed_into_kernel,
        grid=(n_blocks,),
        in_specs=[pl.BlockSpec((blk_n, f), lambda i: (i, 0)),
                  pl.BlockSpec((f, d_emb), lambda i: (0, 0)),
                  pl.BlockSpec((1, d_emb), lambda i: (0, 0)),
                  # aliased destination: stays in HBM, never streamed to VMEM
                  pl.BlockSpec(memory_space=pl.ANY)],
        out_specs=pl.BlockSpec((blk_n, d_emb), lambda i: (i, col_block)),
        out_shape=jax.ShapeDtypeStruct((n, d_total), slab.dtype),
        input_output_aliases={3: 0},
        compiler_params=cparams,
        cost_estimate=cost,
    )(feature, weight, bias2d, slab)


# ---------------------------------------------------------------------------
# Module-level port
# ---------------------------------------------------------------------------
class Batch:
    """Minimal stand-in for the torch-geometric style batch object."""

    def __init__(self, **kwargs):
        for k, v in kwargs.items():
            setattr(self, k, v)


class InvariantFeaturesPallas:
    """JAX/Pallas port of InvariantFeatures with a Linear `embedding`.

    Default path follows the PyTorch semantics exactly (concatenate onto
    batch.invariant_node_features).  For stacks of many embeddings, prefer
    preallocating the final-width slab once and calling
    invariant_features_write_into per embedding (see __main__, case 5).
    """

    def __init__(self, feature_name, weight, bias, tile_n=2048):
        self.feature_name = feature_name
        self.weight = weight
        self.bias = bias
        self.tile_n = tile_n

    def __call__(self, batch):
        feat = getattr(batch, self.feature_name)
        prev = getattr(batch, "invariant_node_features", None)
        batch.invariant_node_features = invariant_features_forward(
            feat, self.weight, self.bias, prev, tile_n=self.tile_n
        )
        return batch


if __name__ == "__main__":
    key = jax.random.PRNGKey(0)
    keys = jax.random.split(key, 10)

    N, F, D_EMB, D_PREV = 256, 32, 64, 32

    feature = jax.random.normal(keys[0], (N, F), dtype=jnp.float32)
    prev = jax.random.normal(keys[1], (N, D_PREV), dtype=jnp.float32)
    weight = jax.random.normal(keys[2], (F, D_EMB), dtype=jnp.float32) * 0.1
    bias = jax.random.normal(keys[3], (D_EMB,), dtype=jnp.float32) * 0.1

    module = InvariantFeaturesPallas("node_feat", weight, bias)

    # Case 1: concat path, unaligned boundary (D_prev=32) -> single-store kernel.
    batch1 = Batch(node_feat=feature, invariant_node_features=prev)
    out1 = module(batch1).invariant_node_features
    jax.block_until_ready(out1)
    ref1 = jnp.concatenate([prev, feature @ weight + bias], axis=-1)
    assert out1.shape == (N, D_PREV + D_EMB)
    assert jnp.allclose(out1, ref1, atol=1e-5, rtol=1e-5)

    # Case 2: no pre-existing invariant_node_features -> set it.
    batch2 = Batch(node_feat=feature)
    out2 = module(batch2).invariant_node_features
    jax.block_until_ready(out2)
    ref2 = feature @ weight + bias
    assert out2.shape == (N, D_EMB)
    assert jnp.allclose(out2, ref2, atol=1e-5, rtol=1e-5)

    # Case 3: multi-block path with a masked partial last block.
    N_big = 1300
    feat_big = jax.random.normal(keys[4], (N_big, F), dtype=jnp.float32)
    prev_big = jax.random.normal(keys[5], (N_big, D_PREV), dtype=jnp.float32)
    out3 = invariant_features_forward(feat_big, weight, bias, prev_big,
                                      tile_n=512)
    jax.block_until_ready(out3)
    ref3 = jnp.concatenate([prev_big, feat_big @ weight + bias], axis=-1)
    assert out3.shape == (N_big, D_PREV + D_EMB)
    assert jnp.allclose(out3, ref3, atol=1e-4, rtol=1e-4)

    # Case 4: 128-aligned concat boundary -> two unmasked slice stores.
    prev128 = jax.random.normal(keys[6], (N, 128), dtype=jnp.float32)
    out4 = invariant_features_forward(feature, weight, bias, prev128)
    jax.block_until_ready(out4)
    ref4 = jnp.concatenate([prev128, feature @ weight + bias], axis=-1)
    assert out4.shape == (N, 128 + D_EMB)
    assert jnp.allclose(out4, ref4, atol=1e-5, rtol=1e-5)

    # Case 5: preallocated slab + aliased column-window writes (O(k) HBM
    # traffic for k stacked embeddings instead of O(k^2) re-concatenation).
    D1 = D2 = 128
    w1 = jax.random.normal(keys[7], (F, D1), dtype=jnp.float32) * 0.1
    b1 = jax.random.normal(keys[8], (D1,), dtype=jnp.float32) * 0.1
    w2 = jax.random.normal(keys[9], (F, D2), dtype=jnp.float32) * 0.1
    b2 = jnp.zeros((D2,), dtype=jnp.float32)
    slab = jnp.zeros((N, D1 + D2), dtype=jnp.float32)
    slab = invariant_features_write_into(slab, feature, w1, b1, col_offset=0)
    slab = invariant_features_write_into(slab, feature, w2, b2, col_offset=D1)
    jax.block_until_ready(slab)
    ref5 = jnp.concatenate([feature @ w1 + b1, feature @ w2 + b2], axis=-1)
    assert slab.shape == (N, D1 + D2)
    assert jnp.allclose(slab, ref5, atol=1e-5, rtol=1e-5)

    print("KERNEL_OK")
</pallas_src>

<mosaic_0001>
module attributes {stable_mosaic.version = 11 : i64} {
  func.func @_embed_concat_kernel(%arg0: i32, %arg1: memref<256x32xf32, #tpu.memory_space<vmem>>, %arg2: memref<256x32xf32, #tpu.memory_space<vmem>>, %arg3: memref<32x64xf32, #tpu.memory_space<vmem>>, %arg4: memref<1x64xf32, #tpu.memory_space<vmem>>, %arg5: memref<256x96xf32, #tpu.memory_space<vmem>>) attributes {dimension_semantics = [#tpu.dimension_semantics<parallel>], iteration_bounds = array<i64: 1>, scalar_prefetch = 0 : i64, scratch_operands = 0 : i64, tpu.core_type = #tpu.core_type<tc>, window_params = [{transform_indices = @transform_0, window_bounds = array<i64: 256, 32>}, {transform_indices = @transform_1, window_bounds = array<i64: 256, 32>}, {pipeline_mode = #tpu.pipeline_mode<synchronous>, transform_indices = @transform_2, window_bounds = array<i64: 32, 64>}, {pipeline_mode = #tpu.pipeline_mode<synchronous>, transform_indices = @transform_3, window_bounds = array<i64: 1, 64>}, {transform_indices = @transform_4, window_bounds = array<i64: 256, 96>}]} {
    %c0 = arith.constant 0 : index
    %c0_0 = arith.constant 0 : index
    %0 = vector.load %arg2[%c0, %c0_0] : memref<256x32xf32, #tpu.memory_space<vmem>>, vector<256x32xf32>
    %c0_1 = arith.constant 0 : index
    %c0_2 = arith.constant 0 : index
    %1 = vector.load %arg3[%c0_1, %c0_2] : memref<32x64xf32, #tpu.memory_space<vmem>>, vector<32x64xf32>
    %cst = arith.constant dense<0.000000e+00> : vector<256x64xf32>
    %2 = tpu.matmul %0, %1, %cst {dimension_numbers = #tpu.dot_dimension_numbers<[1], [0], [0], [1], [0, 0, 1, 1], [], []>} : vector<256x32xf32>, vector<32x64xf32>, vector<256x64xf32> -> vector<256x64xf32>
    %c0_3 = arith.constant 0 : index
    %c0_4 = arith.constant 0 : index
    %3 = vector.load %arg4[%c0_3, %c0_4] : memref<1x64xf32, #tpu.memory_space<vmem>>, vector<1x64xf32>
    %4 = vector.broadcast %3 : vector<1x64xf32> to vector<256x64xf32>
    %5 = arith.addf %2, %4 : vector<256x64xf32>
    %c0_5 = arith.constant 0 : index
    %c0_6 = arith.constant 0 : index
    %6 = vector.load %arg1[%c0_5, %c0_6] : memref<256x32xf32, #tpu.memory_space<vmem>>, vector<256x32xf32>
    %7 = tpu.concatenate %6, %5 in 1 : vector<256x32xf32>, vector<256x64xf32> -> vector<256x96xf32>
    %c0_7 = arith.constant 0 : index
    %c0_8 = arith.constant 0 : index
    %8 = vector.load %arg5[%c0_7, %c0_8] : memref<256x96xf32, #tpu.memory_space<vmem>>, vector<256x96xf32>
    tpu.vector_store %arg5[%c0_7, %c0_8], %7 {strides = array<i32>} : memref<256x96xf32, #tpu.memory_space<vmem>>, vector<256x96xf32>,
    return
  }
  func.func @transform_0(%arg0: i32) -> (i32, i32) {
    %c0_i32 = arith.constant 0 : i32
    %c0_i32_0 = arith.constant 0 : i32
    return %arg0, %c0_i32 : i32, i32
  }
  func.func @transform_1(%arg0: i32) -> (i32, i32) {
    %c0_i32 = arith.constant 0 : i32
    %c0_i32_0 = arith.constant 0 : i32
    return %arg0, %c0_i32 : i32, i32
  }
  func.func @transform_2(%arg0: i32) -> (i32, i32) {
    %c0_i32 = arith.constant 0 : i32
    %c0_i32_0 = arith.constant 0 : i32
    %c0_i32_1 = arith.constant 0 : i32
    return %c0_i32, %c0_i32_0 : i32, i32
  }
  func.func @transform_3(%arg0: i32) -> (i32, i32) {
    %c0_i32 = arith.constant 0 : i32
    %c0_i32_0 = arith.constant 0 : i32
    %c0_i32_1 = arith.constant 0 : i32
    return %c0_i32, %c0_i32_0 : i32, i32
  }
  func.func @transform_4(%arg0: i32) -> (i32, i32) {
    %c0_i32 = arith.constant 0 : i32
    %c0_i32_0 = arith.constant 0 : i32
    return %arg0, %c0_i32 : i32, i32
  }
}

</mosaic_0001>

<bundles_post_ra>
// kernel: invariant_features_forward.1
= control target key start
LH: loop header
LB: loop body
LE: loop exit
PB: predicated region body
PF: predicated region fallthrough
CT: control target
= control target key end

     0   :  { %vm60_vm0 = vcmask 261120   ;;  %s745_s8 = smov 32   ;;  %vm574_vm1 = vcmask 785408   ;;  %s1236_s2 = inlined_call_operand.vmem [shape: f32[32,64], index: 2, kind: input, shape index: {}]   ;;  %s1237_s1 = inlined_call_operand.vmem [shape: f32[256,32], index: 1, kind: input, shape index: {}]   ;;  %s1238_s3 = inlined_call_operand.vmem [shape: f32[1,64], index: 3, kind: input, shape index: {}]   ;;  %s1239_s0 = inlined_call_operand.vmem [shape: f32[256,32], index: 0, kind: input, shape index: {}]   ;;  %s1240_s4 = inlined_call_operand.vmem [shape: f32[256,96], index: 4, kind: output, shape index: {}]  }
   0x1   :  { %v52_v0 = vld [vmem:[%s1236_s2 + $0x18] sm:$0xff]  ;;  %v51_v1 = vld [vmem:[%s1236_s2 + $0x10] sm:$0xff]  ;;  %v50_v2 = vld [vmem:[%s1236_s2 + $0x8] sm:$0xff] }
   0x2   :  { %680 = vmatprep.subr.mxu0 %v52_v0  ;;  %736 = vmatprep.subr.mxu1 %v52_v0  ;;  %v49_v3 = vld [vmem:[%s1236_s2] sm:$0xff]  ;;  %v18_v6 = vld [vmem:[%s1237_s1 + $0x8] sm:$0xff]  ;;  %v19_v8 = vld [vmem:[%s1237_s1 + $0x10] sm:$0xff] }
   0x3   :  { %681 = vmatpush3.msra.mxu0 %v52_v0  ;;  %740 = vmatpush3.msra.mxu1 %v52_v0  ;;  %v17_v4 = vld [vmem:[%s1237_s1] sm:$0xff]  ;;  %v34_v7 = vld [vmem:[%s1237_s1 + $0x88] sm:$0xff]  ;;  %v35_v9 = vld [vmem:[%s1237_s1 + $0x90] sm:$0xff] }
   0x4   :  { %682 = vmatprep.subr.mxu0 %v51_v1  ;;  %737 = vmatprep.subr.mxu1 %v51_v1  ;;  %v33_v5 = vld [vmem:[%s1237_s1 + $0x80] sm:$0xff]  ;;  %v20_v10 = vld [vmem:[%s1237_s1 + $0x18] sm:$0xff]  ;;  %v22_v14 = vld [vmem:[%s1237_s1 + $0x28] sm:$0xff] }
   0x5   :  { %683 = vmatpush3.msra.mxu0 %v51_v1  ;;  %741 = vmatpush3.msra.mxu1 %v51_v1  ;;  %v36_v11 = vld [vmem:[%s1237_s1 + $0x98] sm:$0xff]  ;;  %v21_v12 = vld [vmem:[%s1237_s1 + $0x20] sm:$0xff]  ;;  %v38_v15 = vld [vmem:[%s1237_s1 + $0xa8] sm:$0xff] }
   0x6   :  { %684 = vmatprep.subr.mxu0 %v50_v2  ;;  %738 = vmatprep.subr.mxu1 %v50_v2  ;;  %v37_v13 = vld [vmem:[%s1237_s1 + $0xa0] sm:$0xff]  ;;  %v23_v16 = vld [vmem:[%s1237_s1 + $0x30] sm:$0xff]  ;;  %v24_v18 = vld [vmem:[%s1237_s1 + $0x38] sm:$0xff] }
   0x7   :  { %685 = vmatpush3.msra.mxu0 %v50_v2  ;;  %742 = vmatpush3.msra.mxu1 %v50_v2  ;;  %v39_v17 = vld [vmem:[%s1237_s1 + $0xb0] sm:$0xff]  ;;  %v40_v19 = vld [vmem:[%s1237_s1 + $0xb8] sm:$0xff]  ;;  %v25_v20 = vld [vmem:[%s1237_s1 + $0x40] sm:$0xff] }
   0x8   :  { %686 = vmatprep.subr.mxu0 %v49_v3  ;;  %739 = vmatprep.subr.mxu1 %v49_v3  ;;  %v41_v21 = vld [vmem:[%s1237_s1 + $0xc0] sm:$0xff]  ;;  %v26_v22 = vld [vmem:[%s1237_s1 + $0x48] sm:$0xff]  ;;  %v27_v24 = vld [vmem:[%s1237_s1 + $0x50] sm:$0xff] }
   0x9   :  { %687 = vmatpush3.msra.mxu0 %v49_v3  ;;  %743 = vmatpush3.msra.mxu1 %v49_v3  ;;  %v42_v23 = vld [vmem:[%s1237_s1 + $0xc8] sm:$0xff]  ;;  %v43_v25 = vld [vmem:[%s1237_s1 + $0xd0] sm:$0xff]  ;;  %v28_v26 = vld [vmem:[%s1237_s1 + $0x58] sm:$0xff] }
   0xa   :  { %688 = vmatprep.mubr.msk.f32.mxu0 %vm60_vm0, %v17_v4  ;;  %712 = vmatprep.mubr.msk.f32.mxu1 %vm60_vm0, %v33_v5  ;;  %v44_v27 = vld [vmem:[%s1237_s1 + $0xd8] sm:$0xff]  ;;  %v29_v28 = vld [vmem:[%s1237_s1 + $0x60] sm:$0xff]  ;;  %v30_v30 = vld [vmem:[%s1237_s1 + $0x68] sm:$0xff] }
   0xb   :  { %689 = vmatmul.mubr.msk.f32.vlgmr.msra.gmra.mxu0 %vm60_vm0, %v18_v6  ;;  %713 = vmatmul.mubr.msk.f32.vlgmr.msra.gmra.mxu1 %vm60_vm0, %v34_v7  ;;  %v45_v29 = vld [vmem:[%s1237_s1 + $0xe0] sm:$0xff]  ;;  %v46_v31 = vld [vmem:[%s1237_s1 + $0xe8] sm:$0xff]  ;;  %v31_v32 = vld [vmem:[%s1237_s1 + $0x70] sm:$0xff] }
   0xc   :  { %691 = vmatprep.mubr.msk.f32.mxu0 %vm60_vm0, %v19_v8  ;;  %715 = vmatprep.mubr.msk.f32.mxu1 %vm60_vm0, %v35_v9  ;;  %v47_v33 = vld [vmem:[%s1237_s1 + $0xf0] sm:$0xff]  ;;  %v32_v34 = vld [vmem:[%s1237_s1 + $0x78] sm:$0xff]  ;;  %v914_v36 = vld [vmem:[%s1238_s3] ss:$0 sm:$0xff] }
   0xd   :  { %v48_v35 = vld [vmem:[%s1237_s1 + $0xf8] sm:$0xff] }
   0xf   :  { %692 = vmatmul.mubr.msk.f32.gmra.mxu0 %vm60_vm0, %v20_v10  ;;  %716 = vmatmul.mubr.msk.f32.gmra.mxu1 %vm60_vm0, %v36_v11 }
  0x10   :  { %694 = vmatprep.mubr.msk.f32.mxu0 %vm60_vm0, %v21_v12  ;;  %718 = vmatprep.mubr.msk.f32.mxu1 %vm60_vm0, %v37_v13 }
  0x13   :  { %695 = vmatmul.mubr.msk.f32.gmra.mxu0 %vm60_vm0, %v22_v14  ;;  %719 = vmatmul.mubr.msk.f32.gmra.mxu1 %vm60_vm0, %v38_v15 }
  0x14   :  { %697 = vmatprep.mubr.msk.f32.mxu0 %vm60_vm0, %v23_v16  ;;  %721 = vmatprep.mubr.msk.f32.mxu1 %vm60_vm0, %v39_v17 }
  0x17   :  { %698 = vmatmul.mubr.msk.f32.gmra.mxu0 %vm60_vm0, %v24_v18  ;;  %722 = vmatmul.mubr.msk.f32.gmra.mxu1 %vm60_vm0, %v40_v19 }
  0x18   :  { %700 = vmatprep.mubr.msk.f32.mxu0 %vm60_vm0, %v25_v20  ;;  %724 = vmatprep.mubr.msk.f32.mxu1 %vm60_vm0, %v41_v21 }
  0x1b   :  { %701 = vmatmul.mubr.msk.f32.gmra.mxu0 %vm60_vm0, %v26_v22  ;;  %725 = vmatmul.mubr.msk.f32.gmra.mxu1 %vm60_vm0, %v42_v23 }
  0x1c   :  { %703 = vmatprep.mubr.msk.f32.mxu0 %vm60_vm0, %v27_v24  ;;  %727 = vmatprep.mubr.msk.f32.mxu1 %vm60_vm0, %v43_v25 }
  0x1f   :  { %704 = vmatmul.mubr.msk.f32.gmra.mxu0 %vm60_vm0, %v28_v26  ;;  %728 = vmatmul.mubr.msk.f32.gmra.mxu1 %vm60_vm0, %v44_v27 }
  0x20   :  { %706 = vmatprep.mubr.msk.f32.mxu0 %vm60_vm0, %v29_v28  ;;  %730 = vmatprep.mubr.msk.f32.mxu1 %vm60_vm0, %v45_v29 }
  0x23   :  { %707 = vmatmul.mubr.msk.f32.gmra.mxu0 %vm60_vm0, %v30_v30  ;;  %731 = vmatmul.mubr.msk.f32.gmra.mxu1 %vm60_vm0, %v46_v31 }
  0x24   :  { %709 = vmatprep.mubr.msk.f32.mxu0 %vm60_vm0, %v31_v32  ;;  %733 = vmatprep.mubr.msk.f32.mxu1 %vm60_vm0, %v47_v33 }
  0x27   :  { %710 = vmatmul.mubr.msk.f32.gmra.mxu0 %vm60_vm0, %v32_v34  ;;  %734 = vmatmul.mubr.msk.f32.gmra.mxu1 %vm60_vm0, %v48_v35 }
  0xcb   :  { %v690_v37 = vpop.f32.mrf.mxu0  ;;  %v714_v38 = vpop.f32.mrf.mxu1 }
  0xcc   :  { %v229_v39 = vadd.f32 %v690_v37, %v914_v36  ;;  %v309_v40 = vadd.f32 %v714_v38, %v914_v36  ;;  %v399_v38 = vld [vmem:[%s1239_s0 + $0x88] sm:$0xff] }
  0xcd   :  { %v223_v41 = vpop.f32.mrf.mxu0  ;;  %v303_v42 = vpop.f32.mrf.mxu1 }
  0xce   :  { %480 = vrot.lane.b32.xlu1 %v309_v40, %s745_s8  ;;  %448 = vrot.lane.b32.xlu0 %v229_v39, %s745_s8  ;;  %v224_v44 = vadd.f32 %v914_v36, %v223_v41  ;;  %v304_v49 = vadd.f32 %v914_v36, %v303_v42  ;;  %v383_v39 = vld [vmem:[%s1239_s0 + $0x8] sm:$0xff] }
  0xcf   :  { %v693_v43 = vpop.f32.mrf.mxu0  ;;  %v717_v46 = vpop.f32.mrf.mxu1 }
  0xd0   :  { %v239_v45 = vadd.f32 %v693_v43, %v914_v36  ;;  %v319_v47 = vadd.f32 %v717_v46, %v914_v36 }
  0xd1   :  { %v233_v48 = vpop.f32.mrf.mxu0  ;;  %v313_v50 = vpop.f32.mrf.mxu1 }
  0xd2   :  { %452 = vrot.lane.b32.xlu1 %v239_v45, %s745_s8  ;;  %446 = vrot.lane.b32.xlu0 %v224_v44, %s745_s8  ;;  %v234_v52 = vadd.f32 %v914_v36, %v233_v48  ;;  %v314_v53 = vadd.f32 %v914_v36, %v313_v50  ;;  %v382_v44 = vld [vmem:[%s1239_s0] sm:$0xff] }
  0xd3   :  { %v696_v51 = vpop.f32.mrf.mxu0  ;;  %v720_v55 = vpop.f32.mrf.mxu1  ;;  %v398_v50 = vld [vmem:[%s1239_s0 + $0x80] sm:$0xff] }
  0xd4   :  { %v249_v56 = vadd.f32 %v696_v51, %v914_v36  ;;  %v329_v60 = vadd.f32 %v720_v55, %v914_v36  ;;  %v384_v55 = vld [vmem:[%s1239_s0 + $0x10] sm:$0xff] }
  0xd5   :  { %v243_v54 = vpop.f32.mrf.mxu0  ;;  %v323_v58 = vpop.f32.mrf.mxu1 }
  0xd6   :  { %484 = vrot.lane.b32.xlu1 %v319_v47, %s745_s8  ;;  %478 = vrot.lane.b32.xlu0 %v304_v49, %s745_s8  ;;  %v244_v57 = vadd.f32 %v914_v36, %v243_v54  ;;  %v324_v61 = vadd.f32 %v914_v36, %v323_v58  ;;  %v401_v49 = vld [vmem:[%s1239_s0 + $0x98] sm:$0xff] }
  0xd7   :  { %v699_v59 = vpop.f32.mrf.mxu0  ;;  %v723_v63 = vpop.f32.mrf.mxu1 }
  0xd8   :  { %v259_v0 = vadd.f32 %v699_v59, %v914_v36  ;;  %v339_v4 = vadd.f32 %v723_v63, %v914_v36 }
  0xd9   :  { %v253_v62 = vpop.f32.mrf.mxu0  ;;  %v333_v2 = vpop.f32.mrf.mxu1 }
  0xda   :  { %450 = vrot.lane.b32.xlu1 %v234_v52, %s745_s8  ;;  %482 = vrot.lane.b32.xlu0 %v314_v53, %s745_s8  ;;  %v254_v1 = vadd.f32 %v914_v36, %v253_v62  ;;  %v334_v5 = vadd.f32 %v914_v36, %v333_v2  ;;  %v386_v62 = vld [vmem:[%s1239_s0 + $0x20] sm:$0xff] }
  0xdb   :  { %v702_v3 = vpop.f32.mrf.mxu0  ;;  %v726_v7 = vpop.f32.mrf.mxu1 }
  0xdc   :  { %v269_v8 = vadd.f32 %v702_v3, %v914_v36  ;;  %v349_v12 = vadd.f32 %v726_v7, %v914_v36  ;;  %v403_v3 = vld [vmem:[%s1239_s0 + $0xa8] sm:$0xff] }
  0xdd   :  { %v263_v6 = vpop.f32.mrf.mxu0  ;;  %v343_v10 = vpop.f32.mrf.mxu1 }
  0xde   :  { %456 = vrot.lane.b32.xlu1 %v249_v56, %s745_s8  ;;  %454 = vrot.lane.b32.xlu0 %v244_v57, %s745_s8  ;;  %v264_v9 = vadd.f32 %v914_v36, %v263_v6  ;;  %v344_v13 = vadd.f32 %v914_v36, %v343_v10  ;;  %v400_v56 = vld [vmem:[%s1239_s0 + $0x90] sm:$0xff] }
  0xdf   :  { %v705_v11 = vpop.f32.mrf.mxu0  ;;  %v729_v15 = vpop.f32.mrf.mxu1  ;;  %v388_v10 = vld [vmem:[%s1239_s0 + $0x30] sm:$0xff] }
  0xe0   :  { %v279_v16 = vadd.f32 %v705_v11, %v914_v36  ;;  %v359_v20 = vadd.f32 %v729_v15, %v914_v36  ;;  %v405_v15 = vld [vmem:[%s1239_s0 + $0xb8] sm:$0xff] }
  0xe1   :  { %v273_v14 = vpop.f32.mrf.mxu0  ;;  %v353_v18 = vpop.f32.mrf.mxu1 }
  0xe2   :  { %488 = vrot.lane.b32.xlu1 %v329_v60, %s745_s8  ;;  %486 = vrot.lane.b32.xlu0 %v324_v61, %s745_s8  ;;  %v274_v17 = vadd.f32 %v914_v36, %v273_v14  ;;  %v354_v21 = vadd.f32 %v914_v36, %v353_v18  ;;  %v387_v61 = vld [vmem:[%s1239_s0 + $0x28] sm:$0xff] }
  0xe3   :  { %v708_v19 = vpop.f32.mrf.mxu0  ;;  %v732_v23 = vpop.f32.mrf.mxu1 }
  0xe4   :  { %v289_v24 = vadd.f32 %v708_v19, %v914_v36  ;;  %v369_v28 = vadd.f32 %v732_v23, %v914_v36 }
  0xe5   :  { %v283_v22 = vpop.f32.mrf.mxu0  ;;  %v363_v26 = vpop.f32.mrf.mxu1 }
  0xe6   :  { %460 = vrot.lane.b32.xlu1 %v259_v0, %s745_s8  ;;  %458 = vrot.lane.b32.xlu0 %v254_v1, %s745_s8  ;;  %v284_v25 = vadd.f32 %v914_v36, %v283_v22  ;;  %v364_v29 = vadd.f32 %v914_v36, %v363_v26  ;;  %v390_v22 = vld [vmem:[%s1239_s0 + $0x40] sm:$0xff] }
  0xe7   :  { %v711_v27 = vpop.f32.mrf.mxu0  ;;  %v735_v31 = vpop.f32.mrf.mxu1 }
  0xe8   :  { %v299_v32 = vadd.f32 %v711_v27, %v914_v36  ;;  %v379_v35 = vadd.f32 %v735_v31, %v914_v36  ;;  %v407_v27 = vld [vmem:[%s1239_s0 + $0xc8] sm:$0xff] }
  0xe9   :  { %v293_v30 = vpop.f32.mrf.mxu0  ;;  %v373_v34 = vpop.f32.mrf.mxu1 }
  0xea   :  { %492 = vrot.lane.b32.xlu1 %v339_v4, %s745_s8  ;;  %490 = vrot.lane.b32.xlu0 %v334_v5, %s745_s8  ;;  %v294_v33 = vadd.f32 %v914_v36, %v293_v30  ;;  %v374_v37 = vadd.f32 %v914_v36, %v373_v34  ;;  %v385_v36 = vld [vmem:[%s1239_s0 + $0x18] sm:$0xff]  ;;  %v402_v4 = vld [vmem:[%s1239_s0 + $0xa0] sm:$0xff] }
  0xeb   :  { %v392_v34 = vld [vmem:[%s1239_s0 + $0x50] sm:$0xff] }
  0xee   :  { %464 = vrot.lane.b32.xlu1 %v269_v8, %s745_s8  ;;  %462 = vrot.lane.b32.xlu0 %v264_v9, %s745_s8  ;;  %v389_v9 = vld [vmem:[%s1239_s0 + $0x38] sm:$0xff] }
  0xf2   :  { %496 = vrot.lane.b32.xlu1 %v349_v12, %s745_s8  ;;  %494 = vrot.lane.b32.xlu0 %v344_v13, %s745_s8 }
  0xf6   :  { %468 = vrot.lane.b32.xlu1 %v279_v16, %s745_s8  ;;  %466 = vrot.lane.b32.xlu0 %v274_v17, %s745_s8  ;;  %v404_v16 = vld [vmem:[%s1239_s0 + $0xb0] sm:$0xff] }
  0xfa   :  { %500 = vrot.lane.b32.xlu1 %v359_v20, %s745_s8  ;;  %498 = vrot.lane.b32.xlu0 %v354_v21, %s745_s8  ;;  %v391_v21 = vld [vmem:[%s1239_s0 + $0x48] sm:$0xff] }
  0xfe   :  { %472 = vrot.lane.b32.xlu1 %v289_v24, %s745_s8  ;;  %470 = vrot.lane.b32.xlu0 %v284_v25, %s745_s8 }
 0x102   :  { %504 = vrot.lane.b32.xlu1 %v369_v28, %s745_s8  ;;  %502 = vrot.lane.b32.xlu0 %v364_v29, %s745_s8  ;;  %v406_v28 = vld [vmem:[%s1239_s0 + $0xc0] sm:$0xff] }
 0x106   :  { %476 = vrot.lane.b32.xlu1 %v299_v32, %s745_s8  ;;  %474 = vrot.lane.b32.xlu0 %v294_v33, %s745_s8  ;;  %v393_v33 = vld [vmem:[%s1239_s0 + $0x58] sm:$0xff] }
 0x10a   :  { %508 = vrot.lane.b32.xlu1 %v379_v35, %s745_s8  ;;  %506 = vrot.lane.b32.xlu0 %v374_v37, %s745_s8 }
 0x140   :  { %v481_v40 = vpop.permute.xlu1 %480  ;;  %v449_v41 = vpop.permute.xlu0 %448 }
 0x141   :  { %v559_v42 = vsel %vm60_vm0, %v399_v38, %v481_v40  ;;  %v543_v43 = vsel %vm60_vm0, %v383_v39, %v449_v41  ;;  %v409_v40 = vld [vmem:[%s1239_s0 + $0xd8] sm:$0xff]  ;;  %v408_v41 = vld [vmem:[%s1239_s0 + $0xd0] sm:$0xff] }
 0x142   :  { %592 = vst.msk [vmem:[%s1240_s4 + $0x88] sm:$0xff] %vm574_vm1, %v559_v42  ;;  %576 = vst.msk [vmem:[%s1240_s4 + $0x8] sm:$0xff] %vm574_vm1, %v543_v43 }
 0x144   :  { %v453_v45 = vpop.permute.xlu1 %452  ;;  %v447_v46 = vpop.permute.xlu0 %446 }
 0x145   :  { %v545_v47 = vsel %vm60_vm0, %v385_v36, %v453_v45  ;;  %v542_v48 = vsel %vm60_vm0, %v382_v44, %v447_v46  ;;  %v395_v45 = vld [vmem:[%s1239_s0 + $0x68] sm:$0xff]  ;;  %v394_v46 = vld [vmem:[%s1239_s0 + $0x60] sm:$0xff] }
 0x146   :  { %578 = vst.msk [vmem:[%s1240_s4 + $0x18] sm:$0xff] %vm574_vm1, %v545_v47  ;;  %575 = vst.msk [vmem:[%s1240_s4] sm:$0xff] %vm574_vm1, %v542_v48 }
 0x148   :  { %v485_v51 = vpop.permute.xlu1 %484  ;;  %v479_v52 = vpop.permute.xlu0 %478 }
 0x149   :  { %v561_v53 = vsel %vm60_vm0, %v401_v49, %v485_v51  ;;  %v558_v54 = vsel %vm60_vm0, %v398_v50, %v479_v52  ;;  %v411_v51 = vld [vmem:[%s1239_s0 + $0xe8] sm:$0xff]  ;;  %v410_v52 = vld [vmem:[%s1239_s0 + $0xe0] sm:$0xff] }
 0x14a   :  { %594 = vst.msk [vmem:[%s1240_s4 + $0x98] sm:$0xff] %vm574_vm1, %v561_v53  ;;  %591 = vst.msk [vmem:[%s1240_s4 + $0x80] sm:$0xff] %vm574_vm1, %v558_v54 }
 0x14c   :  { %v451_v57 = vpop.permute.xlu1 %450  ;;  %v483_v58 = vpop.permute.xlu0 %482 }
 0x14d   :  { %v544_v59 = vsel %vm60_vm0, %v384_v55, %v451_v57  ;;  %v560_v60 = vsel %vm60_vm0, %v400_v56, %v483_v58  ;;  %v397_v57 = vld [vmem:[%s1239_s0 + $0x78] sm:$0xff]  ;;  %v396_v58 = vld [vmem:[%s1239_s0 + $0x70] sm:$0xff] }
 0x14e   :  { %577 = vst.msk [vmem:[%s1240_s4 + $0x10] sm:$0xff] %vm574_vm1, %v544_v59  ;;  %593 = vst.msk [vmem:[%s1240_s4 + $0x90] sm:$0xff] %vm574_vm1, %v560_v60 }
 0x150   :  { %v457_v63 = vpop.permute.xlu1 %456  ;;  %v455_v0 = vpop.permute.xlu0 %454 }
 0x151   :  { %v547_v1 = vsel %vm60_vm0, %v387_v61, %v457_v63  ;;  %v546_v2 = vsel %vm60_vm0, %v386_v62, %v455_v0  ;;  %v413_v63 = vld [vmem:[%s1239_s0 + $0xf8] sm:$0xff]  ;;  %v412_v0 = vld [vmem:[%s1239_s0 + $0xf0] sm:$0xff] }
 0x152   :  { %580 = vst.msk [vmem:[%s1240_s4 + $0x28] sm:$0xff] %vm574_vm1, %v547_v1  ;;  %579 = vst.msk [vmem:[%s1240_s4 + $0x20] sm:$0xff] %vm574_vm1, %v546_v2 }
 0x154   :  { %v489_v5 = vpop.permute.xlu1 %488  ;;  %v487_v6 = vpop.permute.xlu0 %486 }
 0x155   :  { %v563_v7 = vsel %vm60_vm0, %v403_v3, %v489_v5  ;;  %v562_v8 = vsel %vm60_vm0, %v402_v4, %v487_v6 }
 0x156   :  { %596 = vst.msk [vmem:[%s1240_s4 + $0xa8] sm:$0xff] %vm574_vm1, %v563_v7  ;;  %595 = vst.msk [vmem:[%s1240_s4 + $0xa0] sm:$0xff] %vm574_vm1, %v562_v8 }
 0x158   :  { %v461_v11 = vpop.permute.xlu1 %460  ;;  %v459_v12 = vpop.permute.xlu0 %458 }
 0x159   :  { %v549_v13 = vsel %vm60_vm0, %v389_v9, %v461_v11  ;;  %v548_v14 = vsel %vm60_vm0, %v388_v10, %v459_v12 }
 0x15a   :  { %582 = vst.msk [vmem:[%s1240_s4 + $0x38] sm:$0xff] %vm574_vm1, %v549_v13  ;;  %581 = vst.msk [vmem:[%s1240_s4 + $0x30] sm:$0xff] %vm574_vm1, %v548_v14 }
 0x15c   :  { %v493_v17 = vpop.permute.xlu1 %492  ;;  %v491_v18 = vpop.permute.xlu0 %490 }
 0x15d   :  { %v565_v19 = vsel %vm60_vm0, %v405_v15, %v493_v17  ;;  %v564_v20 = vsel %vm60_vm0, %v404_v16, %v491_v18 }
 0x15e   :  { %598 = vst.msk [vmem:[%s1240_s4 + $0xb8] sm:$0xff] %vm574_vm1, %v565_v19  ;;  %597 = vst.msk [vmem:[%s1240_s4 + $0xb0] sm:$0xff] %vm574_vm1, %v564_v20 }
 0x160   :  { %v465_v23 = vpop.permute.xlu1 %464  ;;  %v463_v24 = vpop.permute.xlu0 %462 }
 0x161   :  { %v551_v25 = vsel %vm60_vm0, %v391_v21, %v465_v23  ;;  %v550_v26 = vsel %vm60_vm0, %v390_v22, %v463_v24 }
 0x162   :  { %584 = vst.msk [vmem:[%s1240_s4 + $0x48] sm:$0xff] %vm574_vm1, %v551_v25  ;;  %583 = vst.msk [vmem:[%s1240_s4 + $0x40] sm:$0xff] %vm574_vm1, %v550_v26 }
 0x164   :  { %v497_v29 = vpop.permute.xlu1 %496  ;;  %v495_v30 = vpop.permute.xlu0 %494 }
 0x165   :  { %v567_v31 = vsel %vm60_vm0, %v407_v27, %v497_v29  ;;  %v566_v32 = vsel %vm60_vm0, %v406_v28, %v495_v30 }
 0x166   :  { %600 = vst.msk [vmem:[%s1240_s4 + $0xc8] sm:$0xff] %vm574_vm1, %v567_v31  ;;  %599 = vst.msk [vmem:[%s1240_s4 + $0xc0] sm:$0xff] %vm574_vm1, %v566_v32 }
 0x168   :  { %v469_v35 = vpop.permute.xlu1 %468  ;;  %v467_v37 = vpop.permute.xlu0 %466 }
 0x169   :  { %v553_v38 = vsel %vm60_vm0, %v393_v33, %v469_v35  ;;  %v552_v39 = vsel %vm60_vm0, %v392_v34, %v467_v37 }
 0x16a   :  { %586 = vst.msk [vmem:[%s1240_s4 + $0x58] sm:$0xff] %vm574_vm1, %v553_v38  ;;  %585 = vst.msk [vmem:[%s1240_s4 + $0x50] sm:$0xff] %vm574_vm1, %v552_v39 }
 0x16c   :  { %v501_v42 = vpop.permute.xlu1 %500  ;;  %v499_v43 = vpop.permute.xlu0 %498 }
 0x16d   :  { %v569_v36 = vsel %vm60_vm0, %v409_v40, %v501_v42  ;;  %v568_v44 = vsel %vm60_vm0, %v408_v41, %v499_v43 }
 0x16e   :  { %602 = vst.msk [vmem:[%s1240_s4 + $0xd8] sm:$0xff] %vm574_vm1, %v569_v36  ;;  %601 = vst.msk [vmem:[%s1240_s4 + $0xd0] sm:$0xff] %vm574_vm1, %v568_v44 }
 0x170   :  { %v473_v47 = vpop.permute.xlu1 %472  ;;  %v471_v48 = vpop.permute.xlu0 %470 }
 0x171   :  { %v555_v49 = vsel %vm60_vm0, %v395_v45, %v473_v47  ;;  %v554_v50 = vsel %vm60_vm0, %v394_v46, %v471_v48 }
 0x172   :  { %588 = vst.msk [vmem:[%s1240_s4 + $0x68] sm:$0xff] %vm574_vm1, %v555_v49  ;;  %587 = vst.msk [vmem:[%s1240_s4 + $0x60] sm:$0xff] %vm574_vm1, %v554_v50 }
 0x174   :  { %v505_v53 = vpop.permute.xlu1 %504  ;;  %v503_v54 = vpop.permute.xlu0 %502 }
 0x175   :  { %v571_v55 = vsel %vm60_vm0, %v411_v51, %v505_v53  ;;  %v570_v56 = vsel %vm60_vm0, %v410_v52, %v503_v54 }
 0x176   :  { %604 = vst.msk [vmem:[%s1240_s4 + $0xe8] sm:$0xff] %vm574_vm1, %v571_v55  ;;  %603 = vst.msk [vmem:[%s1240_s4 + $0xe0] sm:$0xff] %vm574_vm1, %v570_v56 }
 0x178   :  { %v477_v59 = vpop.permute.xlu1 %476  ;;  %v475_v60 = vpop.permute.xlu0 %474 }
 0x179   :  { %v557_v61 = vsel %vm60_vm0, %v397_v57, %v477_v59  ;;  %v556_v62 = vsel %vm60_vm0, %v396_v58, %v475_v60 }
 0x17a   :  { %590 = vst.msk [vmem:[%s1240_s4 + $0x78] sm:$0xff] %vm574_vm1, %v557_v61  ;;  %589 = vst.msk [vmem:[%s1240_s4 + $0x70] sm:$0xff] %vm574_vm1, %v556_v62 }
 0x17c   :  { %v509_v1 = vpop.permute.xlu1 %508  ;;  %v507_v2 = vpop.permute.xlu0 %506 }
 0x17d   :  { %v573_v3 = vsel %vm60_vm0, %v413_v63, %v509_v1  ;;  %v572_v4 = vsel %vm60_vm0, %v412_v0, %v507_v2 }
 0x17e   :  { %606 = vst.msk [vmem:[%s1240_s4 + $0xf8] sm:$0xff] %vm574_vm1, %v573_v3  ;;  %605 = vst.msk [vmem:[%s1240_s4 + $0xf0] sm:$0xff] %vm574_vm1, %v572_v4 }

</bundles_post_ra>
